<compile_context>
chip_gen: v7x
topology: tpu7x:2x2x1
jax: 0.10.0
libtpu: 0.0.40
codegen_flags: <defaults>
</compile_context>

<pallas_src>
import functools

import jax
import jax.numpy as jnp
from jax import lax
from jax.experimental import pallas as pl
from jax.experimental.pallas import tpu as pltpu


def highway_gate_kernel(v_ref, z_ref, w_ref, b_ref, o_ref):
    v = v_ref[...]                      # (tile_m, D) float32
    z = z_ref[...]                      # (tile_m, D) float32
    w = w_ref[...]                      # (D_out, D_in) nn.Linear layout (f32 or bf16)
    # Linear: v @ W^T + b. Contract v's feature axis (1) against W's input axis (1)
    # so the weight is consumed exactly as nn.Linear stores it.
    logits = lax.dot_general(
        v.astype(w.dtype), w,
        dimension_numbers=(((1,), (1,)), ((), ())),
        preferred_element_type=jnp.float32,
    ) + b_ref[...]
    g = jax.nn.sigmoid(logits)          # exp on EUP; epilogue stays f32 (v5e: no bf16 VPU)
    # g*v + (1-g)*z  ==  z + g*(v - z): one fewer VALU op per element.
    o_ref[...] = (z + g * (v - z)).astype(o_ref.dtype)


def _choose_tile_m(M, D, stream_bytes, resident_bytes, vmem_budget=40 * 1024 * 1024):
    """Largest row tile (multiple of 8, capped at 1024 rows) whose double-buffered
    v/z/out streams plus the resident weight fit inside the VMEM budget."""
    per_row = 3 * 2 * D * stream_bytes              # v, z, out; each double-buffered
    cap = max(8, (vmem_budget - resident_bytes) // per_row)
    tile = int(min(1024, cap, M))
    if tile < M:
        tile = max(8, (tile // 8) * 8)              # keep the (8, 128) sublane constraint
    # Give v7x's two TensorCores at least two grid steps when the shape allows it.
    if tile >= M and M >= 16 and (M // 2) % 8 == 0:
        tile = M // 2
    return tile


@functools.partial(jax.jit, static_argnames=("tile_m", "dot_dtype"))
def highway_gate(v, z, weight, bias, *, tile_m=None, dot_dtype=jnp.bfloat16):
    """v, z: (..., D). weight: (D, D) in nn.Linear (out, in) layout. bias: (D,).

    Matmul operands are cast to `dot_dtype` (default bf16: halves the weight's
    HBM/VMEM footprint and uses the v6e/v7x bf16 MXU); accumulation and the
    element-wise gate stay in float32.  Use dot_dtype=jnp.float32 for exact
    module numerics.
    """
    orig_shape = v.shape
    D = orig_shape[-1]
    v2 = v.reshape(-1, D)
    z2 = z.reshape(-1, D)
    M = v2.shape[0]
    assert z2.shape == (M, D) and weight.shape == (D, D) and bias.shape == (D,)

    stream_bytes = v2.dtype.itemsize
    w_bytes = jnp.dtype(dot_dtype).itemsize
    weight_resident = 2 * D * D * w_bytes           # pipeline keeps two weight buffers

    if tile_m is None:
        tile_m = _choose_tile_m(M, D, stream_bytes, weight_resident)
    assert tile_m == M or tile_m % 8 == 0, "tile_m must be a multiple of 8 (or equal M)"

    w_cast = weight.astype(dot_dtype)               # no transpose; contraction handled in-kernel
    b2 = bias.reshape(1, D).astype(jnp.float32)

    grid = (pl.cdiv(M, tile_m),)
    cost = pl.CostEstimate(
        flops=2 * M * D * D + 5 * M * D,
        transcendentals=M * D,
        bytes_accessed=3 * M * D * stream_bytes + D * D * w_bytes + D * 4,
    )
    out = pl.pallas_call(
        highway_gate_kernel,
        out_shape=jax.ShapeDtypeStruct((M, D), v.dtype),
        grid_spec=pltpu.PrefetchScalarGridSpec(
            num_scalar_prefetch=0,
            grid=grid,
            in_specs=[
                pl.BlockSpec((tile_m, D), lambda i: (i, 0)),   # v (streamed)
                pl.BlockSpec((tile_m, D), lambda i: (i, 0)),   # z (streamed)
                pl.BlockSpec((D, D), lambda i: (0, 0)),        # weight (resident, constant block)
                pl.BlockSpec((1, D), lambda i: (0, 0)),        # bias  (resident)
            ],
            out_specs=pl.BlockSpec((tile_m, D), lambda i: (i, 0)),
        ),
        compiler_params=pltpu.CompilerParams(
            dimension_semantics=("parallel",),
            # Above v6e's 32 MiB scoped default, comfortably below v7x's 64 MiB physical.
            vmem_limit_bytes=48 * 1024 * 1024,
        ),
        cost_estimate=cost,
    )(v2, z2, w_cast, b2)
    return out.reshape(orig_shape)


def highway_gate_ref(v, z, weight, bias, *, dot_dtype=jnp.float32, fused=False):
    logits = jnp.dot(v.astype(dot_dtype), weight.astype(dot_dtype).T,
                     preferred_element_type=jnp.float32) + bias
    g = jax.nn.sigmoid(logits)
    if fused:
        return z + g * (v - z)
    return g * v + (1.0 - g) * z


if __name__ == "__main__":
    key = jax.random.PRNGKey(0)
    batch, seq, dim = 2, 8, 128
    k1, k2, k3, k4 = jax.random.split(key, 4)

    v = jax.random.normal(k1, (batch, seq, dim), dtype=jnp.float32)
    z = jax.random.normal(k2, (batch, seq, dim), dtype=jnp.float32)
    # Deterministic nn.Linear-style params: weight (dim, dim) in (out, in) layout, bias (dim,)
    bound = 1.0 / jnp.sqrt(dim)
    weight = jax.random.uniform(k3, (dim, dim), minval=-bound, maxval=bound,
                                dtype=jnp.float32)
    bias = jax.random.uniform(k4, (dim,), minval=-bound, maxval=bound,
                              dtype=jnp.float32)

    # Exact-precision path (module semantics): f32 dot operands.
    out_f32 = highway_gate(v, z, weight, bias, dot_dtype=jnp.float32)
    # Fast path (v6e/v7x): bf16 dot operands, f32 accumulation + f32 epilogue.
    out_bf16 = highway_gate(v, z, weight, bias, dot_dtype=jnp.bfloat16)
    jax.block_until_ready((out_f32, out_bf16))

    ref_f32 = highway_gate_ref(v, z, weight, bias, dot_dtype=jnp.float32)
    ref_bf16 = highway_gate_ref(v, z, weight, bias, dot_dtype=jnp.bfloat16, fused=True)

    err_f32 = jnp.max(jnp.abs(out_f32 - ref_f32))
    assert jnp.allclose(out_f32, ref_f32, atol=1e-5, rtol=1e-5), f"f32 max err {err_f32}"
    err_bf16 = jnp.max(jnp.abs(out_bf16 - ref_bf16))
    assert jnp.allclose(out_bf16, ref_bf16, atol=1e-4, rtol=1e-4), f"bf16 max err {err_bf16}"

    print("KERNEL_OK")
</pallas_src>

<mosaic_0001>
module attributes {stable_mosaic.version = 11 : i64} {
  func.func @highway_gate_kernel(%arg0: i32, %arg1: memref<8x128xf32, #tpu.memory_space<vmem>>, %arg2: memref<8x128xf32, #tpu.memory_space<vmem>>, %arg3: memref<128x128xf32, #tpu.memory_space<vmem>>, %arg4: memref<1x128xf32, #tpu.memory_space<vmem>>, %arg5: memref<8x128xf32, #tpu.memory_space<vmem>>) attributes {dimension_semantics = [#tpu.dimension_semantics<parallel>], iteration_bounds = array<i64: 2>, scalar_prefetch = 0 : i64, scratch_operands = 0 : i64, tpu.core_type = #tpu.core_type<tc>, window_params = [{transform_indices = @transform_0, window_bounds = array<i64: 8, 128>}, {transform_indices = @transform_1, window_bounds = array<i64: 8, 128>}, {pipeline_mode = #tpu.pipeline_mode<synchronous>, transform_indices = @transform_2, window_bounds = array<i64: 128, 128>}, {pipeline_mode = #tpu.pipeline_mode<synchronous>, transform_indices = @transform_3, window_bounds = array<i64: 1, 128>}, {transform_indices = @transform_4, window_bounds = array<i64: 8, 128>}]} {
    %c0 = arith.constant 0 : index
    %c0_0 = arith.constant 0 : index
    %0 = vector.load %arg1[%c0, %c0_0] : memref<8x128xf32, #tpu.memory_space<vmem>>, vector<8x128xf32>
    %c0_1 = arith.constant 0 : index
    %c0_2 = arith.constant 0 : index
    %1 = vector.load %arg2[%c0_1, %c0_2] : memref<8x128xf32, #tpu.memory_space<vmem>>, vector<8x128xf32>
    %c0_3 = arith.constant 0 : index
    %c0_4 = arith.constant 0 : index
    %2 = vector.load %arg3[%c0_3, %c0_4] : memref<128x128xf32, #tpu.memory_space<vmem>>, vector<128x128xf32>
    %cst = arith.constant dense<0.000000e+00> : vector<8x128xf32>
    %3 = tpu.matmul %0, %2, %cst {dimension_numbers = #tpu.dot_dimension_numbers<[1], [1], [0], [0], [0, 0, 1, 0], [], []>} : vector<8x128xf32>, vector<128x128xf32>, vector<8x128xf32> -> vector<8x128xf32>
    %c0_5 = arith.constant 0 : index
    %c0_6 = arith.constant 0 : index
    %4 = vector.load %arg4[%c0_5, %c0_6] : memref<1x128xf32, #tpu.memory_space<vmem>>, vector<1x128xf32>
    %5 = vector.broadcast %4 : vector<1x128xf32> to vector<8x128xf32>
    %6 = arith.addf %3, %5 : vector<8x128xf32>
    %7 = arith.negf %6 : vector<8x128xf32>
    %8 = math.exp %7 : vector<8x128xf32>
    %cst_7 = arith.constant 1.000000e+00 : f32
    %9 = vector.broadcast %cst_7 : f32 to vector<8x128xf32>
    %10 = arith.addf %9, %8 : vector<8x128xf32>
    %11 = arith.divf %9, %10 : vector<8x128xf32>
    %12 = arith.subf %0, %1 : vector<8x128xf32>
    %13 = arith.mulf %11, %12 : vector<8x128xf32>
    %14 = arith.addf %1, %13 : vector<8x128xf32>
    %c0_8 = arith.constant 0 : index
    %c0_9 = arith.constant 0 : index
    %15 = vector.load %arg5[%c0_8, %c0_9] : memref<8x128xf32, #tpu.memory_space<vmem>>, vector<8x128xf32>
    tpu.vector_store %arg5[%c0_8, %c0_9], %14 {strides = array<i32>} : memref<8x128xf32, #tpu.memory_space<vmem>>, vector<8x128xf32>,
    return
  }
  func.func @transform_0(%arg0: i32) -> (i32, i32) {
    %c0_i32 = arith.constant 0 : i32
    %c0_i32_0 = arith.constant 0 : i32
    return %arg0, %c0_i32 : i32, i32
  }
  func.func @transform_1(%arg0: i32) -> (i32, i32) {
    %c0_i32 = arith.constant 0 : i32
    %c0_i32_0 = arith.constant 0 : i32
    return %arg0, %c0_i32 : i32, i32
  }
  func.func @transform_2(%arg0: i32) -> (i32, i32) {
    %c0_i32 = arith.constant 0 : i32
    %c0_i32_0 = arith.constant 0 : i32
    %c0_i32_1 = arith.constant 0 : i32
    return %c0_i32, %c0_i32_0 : i32, i32
  }
  func.func @transform_3(%arg0: i32) -> (i32, i32) {
    %c0_i32 = arith.constant 0 : i32
    %c0_i32_0 = arith.constant 0 : i32
    %c0_i32_1 = arith.constant 0 : i32
    return %c0_i32, %c0_i32_0 : i32, i32
  }
  func.func @transform_4(%arg0: i32) -> (i32, i32) {
    %c0_i32 = arith.constant 0 : i32
    %c0_i32_0 = arith.constant 0 : i32
    return %arg0, %c0_i32 : i32, i32
  }
}

</mosaic_0001>

<bundles_post_ra>
// kernel: highway_gate.1
= control target key start
LH: loop header
LB: loop body
LE: loop exit
PB: predicated region body
PF: predicated region fallthrough
CT: control target
= control target key end

     0   :  { %s1091_s0 = inlined_call_operand.hbm [shape: f32[16,128], index: 0, kind: input, shape index: {}]   ;;  %s1092_s1 = inlined_call_operand.hbm [shape: f32[16,128], index: 1, kind: input, shape index: {}]   ;;  %s1093_s2 = inlined_call_operand.hbm [shape: f32[128,128], index: 2, kind: input, shape index: {}]   ;;  %s1094_s3 = inlined_call_operand.vmem [shape: f32[1,128], index: 3, kind: input, shape index: {}]   ;;  %s1095_s4 = inlined_call_operand.hbm [shape: f32[16,128], index: 4, kind: output, shape index: {}]  }
   0x1   :  { %1100 = sst [smem:[#allocation13_spill]] %s1093_s2 }
   0x2   :  { %9 = vsyncpa [#allocation3], 0 }
   0x3   :  { %11 = vsyncpa [#allocation3 + $0x1], 0 }
   0x4   :  { %12 = vsyncpa [#allocation6], 0 }
   0x5   :  { %14 = vsyncpa [#allocation6 + $0x1], 0 }
   0x6   :  { %15 = vsyncpa [#allocation4], 0 }
   0x7   :  { %17 = vsyncpa [#allocation4 + $0x1], 0  ;;  %s849_s15 = smov 0   ;;  %s851_s16 = smov 0  }
   0x8   :  { %s853_s17 = smov 0   ;;  %s855_s18 = smov 0  }
   0x9 LB: > { %s870_s19 = sadd.s32 4294967295, %s813_s18   ;;  %s485_s20 = sadd.s32 4294967294, %s813_s18   ;;  %s813_s18 = sphi %s855_s18, %s1119_s18   ;;  %s809_s17 = sphi %s853_s17, %s1118_s17   ;;  %s805_s16 = sphi %s851_s16, %s1117_s16   ;;  %s801_s15 = sphi %s849_s15, %s1116_s15  }
   0xa   : > { %p43_p0 = scmp.ne.s32.totalorder %s805_s16, %s801_s15  ;;  %p1096_p1 = scmp.eq.s32.totalorder %s870_s19, 0 }
   0xb   : > { %p141_p3 = scmp.eq.s32.totalorder %s485_s20, 1  ;;  %p486_p5 = scmp.ge.s32.totalorder %s813_s18, 1 }
   0xc   : > { %p879_p4 = por %p1096_p1, %p43_p0  ;;  %p148_p7 = scmp.lt.s32.totalorder %s813_s18, 3 }
   0xd   : > { %p884_p6 = por %p141_p3, %p43_p0  ;;  %s815_s24 = smov [#allocation7]  }
   0xe   : > { %s1101_s21 = scalar_select %p879_p4, 1, 0 }
   0xf   : > { %s1102_s22 = scalar_select %p884_p6, 1, 0 }
  0x10   : > { %p889_p8 = pnand %p486_p5, %p148_p7  ;;  %s160_s25 = sshll.u32 %s815_s24, 4  ;;  %s893_s25 = int_to_ptr.vmem [resolvable:$true] %s160_s25 }
  0x11   : > { %s905_s27 = sadd.s32 1, %s813_s18   ;;  %s30_s28 = sadd.s32 1, %s809_s17 }
  0x12   : > { %s1103_s23 = scalar_select %p889_p8, 1, 0 }
  0x13   : > { %p590_p9 = pneg %p889_p8  ;;  %s27_s29 = ssub.s32 %s813_s18, %s905_s27 }
  0x14   : > { %s1105_s2 = sld [smem:[#allocation13_spill]] }
  0x15   : > { %p900_p11 = pnand %p590_p9, %p1096_p1 }
  0x17   : > { %p653_p13 = pneg %p900_p11 }
  0x1a   : > { %s651_s6 = scalar_lea.hbm %s1105_s2, 2048 }
  0x1b   : > { %p652_p12 = scmp.ne.s32.totalorder %s1105_s2, %s651_s6  ;;  %p658_p5 = scmp.lt.u32.totalorder %s651_s6, %s1105_s2 }
  0x1d   : > { %p654_p0 = pnand %p653_p13, %p652_p12 }
  0x1f   : > { %p655_p3 = pneg %p654_p0 }
  0x21   : > { %p660_p7 = pnand %p658_p5, %p655_p3 }
  0x23   : > { %663 = shalt.err (!%p660_p7)
}
  0x24   : > { %s664_s11 = scalar_lea.vmem %s893_s25, 2048  ;;  %p672_p2 = scmp.lt.s32.totalorder %s893_s25, %s893_s25 }
  0x25   : > { %p665_p9 = scmp.ne.s32.totalorder %s893_s25, %s664_s11  ;;  %p673_p6 = scmp.lt.s32.totalorder %s664_s11, %s664_s11 }
  0x27   : > { %p667_p10 = pnand %p665_p9, %p653_p13  ;;  %p674_p4 = por %p673_p6, %p672_p2 }
  0x29   : > { %p668_p1 = pneg %p667_p10 }
  0x2b   : > { %p675_p8 = pnand %p674_p4, %p668_p1 }
  0x2d   : > { %678 = shalt.err (!%p675_p8)
}
  0x2e   : > { %s816_s12 = smov 128   ;;  %s817_s13 = smov 8  }
  0x2f   : > { %593 = dma.hbm_to_vmem [thread:$0]  (!%p900_p11), %s1105_s2, 2048, %s893_s25, [#allocation6], %s816_s12, %s816_s12, %s817_s13  }
  0x30   : > { %p28_p2 = scmp.eq.s32.totalorder %s27_s29, 0  ;;  %p37_p1 = scmp.ne.s32.totalorder %s809_s17, %s805_s16 }
  0x31   : > { %p38_p4 = scmp.eq.s32.totalorder %s813_s18, 0  ;;  %p606_p6 = scmp.lt.s32.totalorder %s813_s18, 2 }
  0x32   : > { %s936_s24 = scalar_select %p28_p2, %s809_s17, %s30_s28  }
  0x33   : > { %p39_p8 = por %p38_p4, %p37_p1  ;;  %p1106_p10 = scmp.eq.s32.totalorder %s870_s19, 1 }
  0x34   : > { %s177_s5 = sand.u32 1, %s809_s17   ;;  %s490_s6 = sshll.u32 %s813_s18, 7 }
  0x35   : > { %p940_p12 = por %p1106_p10, %p37_p1  ;;  %s946_s7 = sshll.u32 %s177_s5, 3 }
  0x36   : > { %s951_s25 = scalar_lea.hbm %s1091_s0, %s490_s6  ;;  %s181_s28 = scalar_lea.vmem [#allocation2], %s946_s7 }
  0x37   : > { %s1107_s30 = scalar_select %p940_p12, 1, 0 }
  0x38   : > { %s188_s29 = sshll.u32 %s181_s28, 4  ;;  %p954_p11 = pnand %p606_p6, %p39_p8  ;;  %s958_s29 = int_to_ptr.vmem [resolvable:$true] %s188_s29 }
  0x39   : > { %s963_s12 = scalar_lea.hbm %s1092_s1, %s490_s6  ;;  %s178_s13 = scalar_lea.sflag [#allocation3], %s177_s5 }
  0x3a   : > { %s679_s14 = scalar_lea.hbm %s951_s25, 128  ;;  %p681_p0 = pneg %p954_p11 }
  0x3b   : > { %p680_p13 = scmp.ne.s32.totalorder %s951_s25, %s679_s14  ;;  %s684_s8 = scalar_lea.hbm %s1091_s0, 256 }
  0x3c   : > { %p685_p7 = scmp.lt.u32.totalorder %s951_s25, %s1091_s0  ;;  %p686_p9 = scmp.lt.u32.totalorder %s684_s8, %s679_s14 }
  0x3d   : > { %p682_p3 = pnand %p681_p0, %p680_p13  ;;  %p688_p1 = scmp.lt.u32.totalorder %s679_s14, %s951_s25 }
  0x3e   : > { %p687_p2 = por %p686_p9, %p685_p7 }
  0x3f   : > { %p683_p5 = pneg %p682_p3 }
  0x40   : > { %p689_p4 = por %p688_p1, %p687_p2 }
  0x42   : > { %p690_p6 = pnand %p689_p4, %p683_p5 }
  0x44   : > { %693 = shalt.err (!%p690_p6)
}
  0x45   : > { %s694_s5 = scalar_lea.vmem %s958_s29, 128  ;;  %s818_s6 = smov [#allocation2]  }
  0x46   : > { %p695_p8 = scmp.ne.s32.totalorder %s958_s29, %s694_s5  ;;  %s699_s10 = sshll.u32 %s818_s6, 4  ;;  %s700_s10 = int_to_ptr.vmem [resolvable:$false] %s699_s10 }
  0x47   : > { %s701_s2 = scalar_lea.vmem %s700_s10, 256  ;;  %p702_p3 = scmp.lt.s32.totalorder %s958_s29, %s700_s10 }
  0x48   : > { %p697_p10 = pnand %p695_p8, %p681_p0  ;;  %p703_p7 = scmp.lt.s32.totalorder %s701_s2, %s694_s5 }
  0x4a   : > { %p698_p13 = pneg %p697_p10  ;;  %p704_p9 = por %p703_p7, %p702_p3 }
  0x4c   : > { %p705_p2 = pnand %p704_p9, %p698_p13 }
  0x4e   : > { %708 = shalt.err (!%p705_p2)
}
  0x4f   : > { %597 = dma.hbm_to_vmem [thread:$0]  (!%p954_p11), %s951_s25, 128, %s958_s29, %s178_s13  }
  0x50   : > { %s195_s11 = sand.u32 1, %s813_s18   ;;  %s199_s14 = scalar_lea.vmem [#allocation5], %s946_s7 }
  0x51   : > { %s206_s20 = sshll.u32 %s199_s14, 4  ;;  %s196_s26 = scalar_lea.sflag [#allocation6], %s195_s11  ;;  %s207_s20 = int_to_ptr.vmem [resolvable:$true] %s206_s20 }
  0x52   : > { %s709_s8 = scalar_lea.hbm %s963_s12, 128  ;;  %s714_s6 = scalar_lea.hbm %s1092_s1, 256 }
  0x53   : > { %p710_p5 = scmp.ne.s32.totalorder %s963_s12, %s709_s8  ;;  %p715_p6 = scmp.lt.u32.totalorder %s963_s12, %s1092_s1 }
  0x54   : > { %p716_p8 = scmp.lt.u32.totalorder %s714_s6, %s709_s8  ;;  %p718_p13 = scmp.lt.u32.totalorder %s709_s8, %s963_s12 }
  0x55   : > { %p712_p1 = pnand %p710_p5, %p681_p0 }
  0x56   : > { %p717_p10 = por %p716_p8, %p715_p6 }
  0x57   : > { %p713_p4 = pneg %p712_p1 }
  0x58   : > { %p719_p3 = por %p718_p13, %p717_p10 }
  0x5a   : > { %p720_p7 = pnand %p719_p3, %p713_p4 }
  0x5c   : > { %723 = shalt.err (!%p720_p7)
}
  0x5d   : > { %s724_s7 = scalar_lea.vmem %s207_s20, 128  ;;  %s819_s25 = smov [#allocation5]  }
  0x5e   : > { %p725_p9 = scmp.ne.s32.totalorder %s207_s20, %s724_s7  ;;  %s729_s29 = sshll.u32 %s819_s25, 4  ;;  %s730_s29 = int_to_ptr.vmem [resolvable:$false] %s729_s29 }
  0x5f   : > { %s731_s13 = scalar_lea.vmem %s730_s29, 256  ;;  %p732_p1 = scmp.lt.s32.totalorder %s207_s20, %s730_s29 }
  0x60   : > { %p727_p2 = pnand %p725_p9, %p681_p0  ;;  %p733_p12 = scmp.lt.s32.totalorder %s731_s13, %s724_s7 }
  0x62   : > { %p728_p5 = pneg %p727_p2  ;;  %p734_p6 = por %p733_p12, %p732_p1 }
  0x64   : > { %p735_p8 = pnand %p734_p6, %p728_p5 }
  0x66   : > { %738 = shalt.err (!%p735_p8)
}
  0x67   : > { %600 = dma.hbm_to_vmem [thread:$0]  (!%p954_p11), %s963_s12, 128, %s207_s20, %s196_s26  }
  0x68   : > { %p1109_p4 = scmp.ne.s32.totalorder %s1103_s23, 0 }
  0x69   : > { %s1014_s11 = sand.u32 (!%p1109_p4), 1, %s805_s16   ;;  %p1110_p12 = scmp.ne.s32.totalorder (!%p1109_p4), %s1101_s21, 0 }
  0x6a   : > { %215 = sbr.rel (%p1109_p4) target bundleno = 444 (0x1bc), region = 36  ;;  %s1017_s14 = sshll.u32 (!%p1109_p4), %s1014_s11, 3 }
  0x6b   : > { %s218_s8 = scalar_lea.sflag (!%p1109_p4), [#allocation3], %s1014_s11  ;;  %s221_s28 = scalar_lea.vmem (!%p1109_p4), [#allocation2], %s1017_s14 }
  0x71   : > { %784 = dma.done.wait (%p1110_p12), %s218_s8, 128  }
  0x72   : > { %786 = vsyncadd (%p1110_p12), %s218_s8, 4294967168  ;;  %s226_s23 = sand.u32 1, %s870_s19   ;;  %s230_s12 = scalar_lea.vmem [#allocation5], %s1017_s14 }
  0x73   : > { %s227_s9 = scalar_lea.sflag [#allocation6], %s226_s23 }
  0x74   : > { %788 = dma.done.wait (%p1110_p12), %s227_s9, 128  }
  0x75   : > { %790 = vsyncadd (%p1110_p12), %s227_s9, 4294967168  ;;  %p1111_p11 = scmp.eq.s32.totalorder %s870_s19, 0 }
  0x77   : > { %792 = dma.done.wait (%p1111_p11), [#allocation6], 2048   ;;  %p1112_p0 = pmov %p1111_p11 }
  0x78   : > { %v820_v0 = vmov 0.0|0.0   ;;  %vm821_vm0 = vmmov 0   ;;  %v822_v1 = vmov 0.0   ;;  %v266_v2 = vld [vmem:[#allocation7] sm:$0xff]  ;;  %v267_v3 = vld [vmem:[#allocation7 + $0x8] sm:$0xff]  ;;  %v268_v5 = vld [vmem:[#allocation7 + $0x10] sm:$0xff] }
  0x79   : > { %794 = vsyncadd (%p1112_p0), [#allocation6], 4294965248  ;;  %556 = vmatprep.subr.bf16.mxu0 %v820_v0  ;;  %553 = vmatprep.mubr.msk.f32.mxu0 %vm821_vm0, %v822_v1  ;;  %v557_v4 = vpack.c.bf16 %v267_v3, %v266_v2  ;;  %v269_v6 = vld [vmem:[#allocation7 + $0x18] sm:$0xff]  ;;  %v270_v8 = vld [vmem:[#allocation7 + $0x20] sm:$0xff]  ;;  %s501_s26 = sshll.u32 %s870_s19, 7  ;;  %s263_s5 = scalar_lea.vmem [#allocation8], %s1017_s14 }
  0x7a   : > { %v560_v7 = vpack.c.bf16 %v269_v6, %v268_v5  ;;  %v271_v9 = vld [vmem:[#allocation7 + $0x28] sm:$0xff]  ;;  %v272_v11 = vld [vmem:[#allocation7 + $0x30] sm:$0xff]  ;;  %v273_v12 = vld [vmem:[#allocation7 + $0x38] sm:$0xff]  ;;  %s383_s6 = sshll.u32 %s263_s5, 4  ;;  %s1047_s7 = scalar_lea.hbm %s1095_s4, %s501_s26  ;;  %s1049_s6 = int_to_ptr.vmem [resolvable:$true] %s383_s6 }
  0x7b   : > { %558 = vmatpush3.bf16.xpose.msra.mxu0 %v557_v4  ;;  %v563_v10 = vpack.c.bf16 %v271_v9, %v270_v8  ;;  %v566_v13 = vpack.c.bf16 %v273_v12, %v272_v11  ;;  %v274_v14 = vld [vmem:[#allocation7 + $0x40] sm:$0xff]  ;;  %v275_v15 = vld [vmem:[#allocation7 + $0x48] sm:$0xff]  ;;  %v276_v17 = vld [vmem:[#allocation7 + $0x50] sm:$0xff]  ;;  %s370_s25 = scalar_lea.sflag [#allocation4], %s1014_s11  ;;  %s739_s29 = scalar_lea.vmem %s1049_s6, 128 }
  0x7c   : > { %559 = vmatprep.subr.bf16.mxu0 %v820_v0  ;;  %v569_v16 = vpack.c.bf16 %v275_v15, %v274_v14  ;;  %v277_v18 = vld [vmem:[#allocation7 + $0x58] sm:$0xff]  ;;  %v278_v20 = vld [vmem:[#allocation7 + $0x60] sm:$0xff]  ;;  %v279_v21 = vld [vmem:[#allocation7 + $0x68] sm:$0xff]  ;;  %p740_p10 = scmp.ne.s32.totalorder %s1049_s6, %s739_s29  ;;  %p1113_p13 = scmp.ne.s32.totalorder %s1107_s30, 0 }
  0x7d   : > { %v572_v19 = vpack.c.bf16 %v277_v18, %v276_v17  ;;  %v575_v22 = vpack.c.bf16 %v279_v21, %v278_v20  ;;  %v280_v23 = vld [vmem:[#allocation7 + $0x70] sm:$0xff]  ;;  %v281_v24 = vld [vmem:[#allocation7 + $0x78] sm:$0xff]  ;;  %v264_v26 = vld [vmem:[%s221_s28] sm:$0xff]  ;;  %s823_s19 = smov [#allocation8]  }
  0x7e   : > { %v578_v25 = vpack.c.bf16 %v281_v24, %v280_v23  ;;  %v498_v27 = vld [vmem:[%s1094_s3] ss:$0 sm:$0xff]  ;;  %v265_v34 = vld [vmem:[%s230_s12] sm:$0xff]  ;;  %p741_p3 = pnand %p740_p10, %p1113_p13  ;;  %s743_s13 = sshll.u32 %s823_s19, 4  ;;  %s744_s13 = int_to_ptr.vmem [resolvable:$false] %s743_s13 }
  0x7f   : > { %v365_v35 = vsub.f32 %v264_v26, %v265_v34  ;;  %s745_s14 = scalar_lea.vmem %s744_s13, 256  ;;  %p746_p9 = scmp.lt.s32.totalorder %s1049_s6, %s744_s13 }
  0x80   : > { %p742_p7 = pneg %p741_p3  ;;  %p747_p2 = scmp.lt.s32.totalorder %s745_s14, %s739_s29 }
  0x82   : > { %p748_p5 = por %p747_p2, %p746_p9 }
  0x83   : > { %561 = vmatpush3.bf16.xpose.msra.mxu0 %v560_v7 }
  0x84   : > { %562 = vmatprep.subr.bf16.mxu0 %v820_v0  ;;  %p749_p1 = pnand %p748_p5, %p742_p7 }
  0x8b   : > { %564 = vmatpush3.bf16.xpose.msra.mxu0 %v563_v10 }
  0x8c   : > { %565 = vmatprep.subr.bf16.mxu0 %v820_v0 }
  0x93   : > { %567 = vmatpush3.bf16.xpose.msra.mxu0 %v566_v13 }
  0x94   : > { %568 = vmatprep.subr.bf16.mxu0 %v820_v0 }
  0x9b   : > { %570 = vmatpush3.bf16.xpose.msra.mxu0 %v569_v16 }
  0x9c   : > { %571 = vmatprep.subr.bf16.mxu0 %v820_v0 }
  0xa3   : > { %573 = vmatpush3.bf16.xpose.msra.mxu0 %v572_v19 }
  0xa4   : > { %574 = vmatprep.subr.bf16.mxu0 %v820_v0 }
  0xab   : > { %576 = vmatpush3.bf16.xpose.msra.mxu0 %v575_v22 }
  0xac   : > { %577 = vmatprep.subr.bf16.mxu0 %v820_v0 }
  0xb3   : > { %579 = vmatpush3.bf16.xpose.msra.mxu0 %v578_v25 }
  0xba   : > { %554 = vmatmul.mubr.f32.vlgmr.msra.gmra.mrb[0].mxu0 %v264_v26 }
 0x18d   : > { %v355_v28 = vpop.f32.mrb[0].mxu0 }
 0x18e   : > { %v356_v29 = vadd.f32 %v498_v27, %v355_v28  ;;  %v555_v30 = vpop.f32.mrb[1].mxu0 }
 0x190   : > { %v499_v31 = vmul.f32 -1.442695, %v356_v29 }
 0x192   : > { %647 = vpow2.f32 %v499_v31 }
 0x19c   : > { %v648_v32 = vpop.eup %647 }
 0x19d   : > { %v362_v33 = vadd.f32 1.0, %v648_v32 }
 0x19f   : > { %649 = vrcp.f32 %v362_v33 }
 0x1a9   : > { %v650_v36 = vpop.eup %649 }
 0x1aa   : > { %v366_v37 = vmul.f32 %v650_v36, %v365_v35 }
 0x1ac   : > { %v367_v38 = vadd.f32 %v366_v37, %v265_v34 }
 0x1ae   : > { %368 = vst [vmem:[%s263_s5] sm:$0xff] %v367_v38 }
 0x1af   : > { %752 = shalt.err (!%p749_p1)
}
 0x1b0   : > { %s753_s11 = scalar_lea.hbm %s1047_s7, 128  ;;  %s757_s23 = scalar_lea.hbm %s1095_s4, 256 }
 0x1b1   : > { %p754_p6 = scmp.ne.s32.totalorder %s1047_s7, %s753_s11  ;;  %p758_p12 = scmp.lt.u32.totalorder %s1047_s7, %s1095_s4 }
 0x1b2   : > { %p759_p11 = scmp.lt.u32.totalorder %s757_s23, %s753_s11  ;;  %p761_p10 = scmp.lt.u32.totalorder %s753_s11, %s1047_s7 }
 0x1b3   : > { %p755_p8 = pnand %p754_p6, %p1113_p13 }
 0x1b4   : > { %p760_p0 = por %p759_p11, %p758_p12 }
 0x1b5   : > { %p756_p4 = pneg %p755_p8 }
 0x1b6   : > { %p762_p3 = por %p761_p10, %p760_p0 }
 0x1b8   : > { %p763_p7 = pnand %p762_p3, %p756_p4 }
 0x1ba   : > { %766 = shalt.err (!%p763_p7)
}
 0x1bb   : > { %588 = dma.vmem_to_hbm [thread:$0]  (%p1113_p13), %s1049_s6, 128, %s1047_s7, %s370_s25  }
 0x1bc PF: > { %s395_s21 = sand.u32 1, %s801_s15   ;;  %p1114_p9 = scmp.ne.s32.totalorder %s1102_s22, 0 }
 0x1bd   : > { %p1115_p2 = scmp.ge.s32.totalorder %s813_s18, 2  ;;  %s396_s20 = scalar_lea.sflag [#allocation4], %s395_s21 }
 0x1bf   : > { %p602_p5 = pnand %p1115_p2, %p1114_p9 }
 0x1c1   : > { %796 = dma.done.wait (!%p602_p5), %s396_s20, 128  }
 0x1c2   : > { %798 = vsyncadd (!%p602_p5), %s396_s20, 4294967168  ;;  %p20_p1 = scmp.ge.s32.totalorder %s905_s27, 4   ;;  %s1116_s15 = smov %s805_s16 }
 0x1c3   : > { %s1117_s16 = smov %s809_s17  ;;  %s1118_s17 = smov %s936_s24 }
 0x1c4   : > { %s1119_s18 = smov %s905_s27  ;;  %22 = sbr.rel (!%p20_p1) target bundleno = 9 (0x9), region = 98 }
 0x1cb   :  { %401 = vsyncpa [#allocation3], 1 }
 0x1cc   :  { %403 = vsyncpa [#allocation3 + $0x1], 1 }
 0x1cd   :  { %404 = vsyncpa [#allocation6], 1 }
 0x1ce   :  { %406 = vsyncpa [#allocation6 + $0x1], 1 }
 0x1cf   :  { %407 = vsyncpa [#allocation4], 1 }
 0x1d0   :  { %409 = vsyncpa [#allocation4 + $0x1], 1 }

</bundles_post_ra>
